<compile_context>
chip_gen: v7x
topology: tpu7x:2x2x1
jax: 0.10.0
libtpu: 0.0.40
codegen_flags: <defaults>
</compile_context>

<pallas_src>
import functools

import jax
import jax.numpy as jnp
from jax.experimental import pallas as pl
from jax.experimental.pallas import tpu as pltpu

_LANES = 128
_SUBLANES = 8
_X_BYTES_BUDGET = 4 * 1024 * 1024   # per-buffer x budget (double-buffered ~8 MiB)


def _classifier_kernel(x_ref, w_ref, b_ref, o_ref):
    # x_ref : (TILE_N, Kp)  bf16/f32  t=0 features, K = A*C (lane-dense)
    # w_ref : (Kp, Lp)      bf16/f32  combined weight  w4[a]*w3[l,c]  (zero-padded)
    # b_ref : (1, Lp)       f32       fused bias sum(w4)*b3 + b4 (pad lanes = -1e30)
    # o_ref : (TILE_N, Lp)  f32       row-softmax probabilities (pad lanes ~= 0)
    logits = jnp.dot(x_ref[...], w_ref[...],
                     preferred_element_type=jnp.float32) + b_ref[...]
    m = jnp.max(logits, axis=-1, keepdims=True)
    e = jnp.exp(logits - m)
    denom = jnp.sum(e, axis=-1, keepdims=True)
    # approx=False: the EUP approximate reciprocal would break the 1e-5 row-sum check.
    o_ref[...] = (e * pl.reciprocal(denom, approx=False)).astype(o_ref.dtype)


def _round_up(x, m):
    return ((x + m - 1) // m) * m


def _pick_tile_n(n, row_bytes):
    """Batch tile: large enough to amortize the ~0.35us/step pipeline overhead,
    small enough for v5e's 16 MiB scoped-VMEM default, and >= 2 grid steps when
    possible so ("parallel",) can shard across v7x's two TensorCores."""
    cap = (_X_BYTES_BUDGET // max(row_bytes, 1)) // _SUBLANES * _SUBLANES
    cap = max(_SUBLANES, min(1024, cap))
    if n < 2 * _SUBLANES:
        return n                                    # one tiny step; splitting buys nothing
    half = _round_up(-(-n // 2), _SUBLANES)         # two roughly equal, 8-row aligned tiles
    return min(cap, half)


@functools.partial(jax.jit, static_argnames=("x_dtype",))
def learning_classier_forward(H, w3, b3, w4, b4, *, x_dtype=jnp.bfloat16):
    """H: (N, A=indim, T, C=indim) f32; w3: (L, C); b3: (L,); w4: (1, A); b4: (1,).

    Returns Po: (N, L) f32, rows sum to 1 (softmax over labels).
    x_dtype is the storage/stream dtype for the feature matrix and combined weight
    (MXU accumulation and softmax stay f32); pass jnp.float32 for bit-tight numerics.
    """
    N, A, T, C = H.shape
    L = w3.shape[0]
    K = A * C
    Kp = _round_up(K, _LANES)           # lane-align the contraction dim
    Lp = _round_up(L, _LANES)           # lane-pad the label dim (keep at 128, not 256)

    # Only the t == 0 slice contributes (see reference trace). With allow_input_fusion
    # below, XLA may fuse this slice + reshape + cast into the Pallas input DMA instead
    # of materializing a separate (N, K) intermediate pass over the dominant x stream.
    x = H[:, :, 0, :].reshape(N, K).astype(x_dtype)
    if Kp != K:
        x = jnp.pad(x, ((0, 0), (0, Kp - K)))

    # Fold linear4 into linear3 (done once, outside the grid loop):
    #   W[a*C + c, l] = w4[a] * w3[l, c];  bias[l] = sum(w4) * b3[l] + b4
    w_comb = (w4.reshape(A, 1, 1).astype(jnp.float32)
              * jnp.transpose(w3).reshape(1, C, L).astype(jnp.float32)).reshape(K, L)
    w_comb = jnp.pad(w_comb, ((0, Kp - K), (0, Lp - L))).astype(x_dtype)
    bias = jnp.sum(w4).astype(jnp.float32) * b3.astype(jnp.float32) + b4[0]
    bias = jnp.concatenate(
        [bias, jnp.full((Lp - L,), -1e30, jnp.float32)]).reshape(1, Lp)

    tile_n = _pick_tile_n(N, Kp * jnp.dtype(x_dtype).itemsize)
    grid = (pl.cdiv(N, tile_n),)

    out = pl.pallas_call(
        _classifier_kernel,
        out_shape=jax.ShapeDtypeStruct((N, Lp), jnp.float32),
        grid=grid,
        in_specs=[
            pl.BlockSpec((tile_n, Kp), lambda i: (i, 0)),   # per-tile features
            pl.BlockSpec((Kp, Lp), lambda i: (0, 0)),       # combined weight (resident)
            pl.BlockSpec((1, Lp), lambda i: (0, 0)),        # fused bias (resident)
        ],
        out_specs=pl.BlockSpec((tile_n, Lp), lambda i: (i, 0)),
        compiler_params=pltpu.CompilerParams(
            dimension_semantics=("parallel",),
            # Allow XLA to fuse the slice/reshape/cast producing x (input 0) into the
            # kernel's input DMA; weights/bias are tiny, leave them unfused.
            allow_input_fusion=[True, False, False],
        ),
    )(x, w_comb, bias)

    # Lane-dense padded store inside the kernel; trim the 128-lane pad here.
    # (Consumers that can use the padded (N, Lp) buffer may skip this slice.)
    return out[:, :L]


def _reference(H, w3, b3, w4, b4):
    # Pure-JAX replica of the PyTorch forward (eval mode) for verification.
    x = H[:, :, 0, :]                                      # (N, A, C)
    os_ = jnp.einsum("nac,lc->nal", x, w3) + b3            # (N, A, L)
    logits = jnp.einsum("a,nal->nl", w4[0], os_) + b4[0]   # (N, L)
    return jax.nn.softmax(logits, axis=-1)


if __name__ == "__main__":
    # Small deterministic configuration.
    N, indim, T, num_label = 2, 32, 8, 16      # H: (N, indim, T, indim)
    key = jax.random.PRNGKey(0)
    k_h, k_w3, k_b3, k_w4, k_b4 = jax.random.split(key, 5)

    H = jax.random.normal(k_h, (N, indim, T, indim), dtype=jnp.float32)

    # Deterministic parameter init (matches nn.Linear default scale).
    bound3 = 1.0 / jnp.sqrt(indim)
    w3 = jax.random.uniform(k_w3, (num_label, indim), jnp.float32, -bound3, bound3)
    b3 = jax.random.uniform(k_b3, (num_label,), jnp.float32, -bound3, bound3)
    bound4 = 1.0 / jnp.sqrt(indim)
    w4 = jax.random.uniform(k_w4, (1, indim), jnp.float32, -bound4, bound4)
    b4 = jax.random.uniform(k_b4, (1,), jnp.float32, -bound4, bound4)

    ref = _reference(H, w3, b3, w4, b4)

    # Default (bf16-streamed) path: f32 accumulation keeps probs within ~1e-3 of f32.
    out = jax.block_until_ready(learning_classier_forward(H, w3, b3, w4, b4))
    assert out.shape == (N, num_label)
    assert jnp.allclose(out, ref, atol=5e-3, rtol=0), "mismatch vs reference (bf16 path)"
    assert jnp.allclose(jnp.sum(out, axis=-1), 1.0, atol=1e-5), "rows must sum to 1"

    # f32 storage path is bit-tight against the reference.
    out_f32 = jax.block_until_ready(
        learning_classier_forward(H, w3, b3, w4, b4, x_dtype=jnp.float32))
    assert jnp.allclose(out_f32, ref, atol=1e-5, rtol=1e-5), "mismatch vs reference (f32 path)"

    print("KERNEL_OK")
</pallas_src>

<mosaic_0001>
module attributes {stable_mosaic.version = 11 : i64} {
  func.func @_classifier_kernel(%arg0: i32, %arg1: memref<2x1024xbf16, #tpu.memory_space<vmem>>, %arg2: memref<1024x128xbf16, #tpu.memory_space<vmem>>, %arg3: memref<1x128xf32, #tpu.memory_space<vmem>>, %arg4: memref<2x128xf32, #tpu.memory_space<vmem>>) attributes {dimension_semantics = [#tpu.dimension_semantics<parallel>], iteration_bounds = array<i64: 1>, scalar_prefetch = 0 : i64, scratch_operands = 0 : i64, tpu.core_type = #tpu.core_type<tc>, window_params = [{transform_indices = @transform_0, window_bounds = array<i64: 2, 1024>}, {pipeline_mode = #tpu.pipeline_mode<synchronous>, transform_indices = @transform_1, window_bounds = array<i64: 1024, 128>}, {pipeline_mode = #tpu.pipeline_mode<synchronous>, transform_indices = @transform_2, window_bounds = array<i64: 1, 128>}, {transform_indices = @transform_3, window_bounds = array<i64: 2, 128>}]} {
    %c0 = arith.constant 0 : index
    %c0_0 = arith.constant 0 : index
    %0 = vector.load %arg1[%c0, %c0_0] : memref<2x1024xbf16, #tpu.memory_space<vmem>>, vector<2x1024xbf16>
    %c0_1 = arith.constant 0 : index
    %c0_2 = arith.constant 0 : index
    %1 = vector.load %arg2[%c0_1, %c0_2] : memref<1024x128xbf16, #tpu.memory_space<vmem>>, vector<1024x128xbf16>
    %cst = arith.constant dense<0.000000e+00> : vector<2x128xf32>
    %2 = tpu.matmul %0, %1, %cst {dimension_numbers = #tpu.dot_dimension_numbers<[1], [0], [0], [1], [0, 0, 1, 1], [], []>} : vector<2x1024xbf16>, vector<1024x128xbf16>, vector<2x128xf32> -> vector<2x128xf32>
    %c0_3 = arith.constant 0 : index
    %c0_4 = arith.constant 0 : index
    %3 = vector.load %arg3[%c0_3, %c0_4] : memref<1x128xf32, #tpu.memory_space<vmem>>, vector<1x128xf32>
    %4 = vector.broadcast %3 : vector<1x128xf32> to vector<2x128xf32>
    %5 = arith.addf %2, %4 : vector<2x128xf32>
    %cst_5 = arith.constant dense<0xFF800000> : vector<2xf32>
    %6 = vector.multi_reduction <maximumf>, %5, %cst_5 [1] : vector<2x128xf32> to vector<2xf32>
    %7 = vector.shape_cast %6 : vector<2xf32> to vector<2x1xf32>
    %8 = vector.broadcast %7 : vector<2x1xf32> to vector<2x128xf32>
    %9 = arith.subf %5, %8 : vector<2x128xf32>
    %10 = math.exp %9 : vector<2x128xf32>
    %cst_6 = arith.constant dense<0.000000e+00> : vector<2xf32>
    %11 = vector.multi_reduction <add>, %10, %cst_6 [1] : vector<2x128xf32> to vector<2xf32>
    %12 = vector.shape_cast %11 : vector<2xf32> to vector<2x1xf32>
    %13 = tpu.reciprocal %12 : vector<2x1xf32> -> vector<2x1xf32>
    %14 = vector.broadcast %13 : vector<2x1xf32> to vector<2x128xf32>
    %15 = arith.mulf %10, %14 : vector<2x128xf32>
    %c0_7 = arith.constant 0 : index
    %c0_8 = arith.constant 0 : index
    %16 = vector.load %arg4[%c0_7, %c0_8] : memref<2x128xf32, #tpu.memory_space<vmem>>, vector<2x128xf32>
    tpu.vector_store %arg4[%c0_7, %c0_8], %15 {strides = array<i32>} : memref<2x128xf32, #tpu.memory_space<vmem>>, vector<2x128xf32>,
    return
  }
  func.func @transform_0(%arg0: i32) -> (i32, i32) {
    %c0_i32 = arith.constant 0 : i32
    %c0_i32_0 = arith.constant 0 : i32
    return %arg0, %c0_i32 : i32, i32
  }
  func.func @transform_1(%arg0: i32) -> (i32, i32) {
    %c0_i32 = arith.constant 0 : i32
    %c0_i32_0 = arith.constant 0 : i32
    %c0_i32_1 = arith.constant 0 : i32
    return %c0_i32, %c0_i32_0 : i32, i32
  }
  func.func @transform_2(%arg0: i32) -> (i32, i32) {
    %c0_i32 = arith.constant 0 : i32
    %c0_i32_0 = arith.constant 0 : i32
    %c0_i32_1 = arith.constant 0 : i32
    return %c0_i32, %c0_i32_0 : i32, i32
  }
  func.func @transform_3(%arg0: i32) -> (i32, i32) {
    %c0_i32 = arith.constant 0 : i32
    %c0_i32_0 = arith.constant 0 : i32
    return %arg0, %c0_i32 : i32, i32
  }
}

</mosaic_0001>

<bundles_post_ra>
// kernel: learning_classier_forward.1
= control target key start
LH: loop header
LB: loop body
LE: loop exit
PB: predicated region body
PF: predicated region fallthrough
CT: control target
= control target key end

     0   :  { %v157_v28 = vlaneseq  ;;  %v1029_v36 = vmov 1966171168   ;;  %s1274_s0 = inlined_call_operand.vmem [shape: bf16[2,1024], index: 0, kind: input, shape index: {}]   ;;  %s1275_s1 = inlined_call_operand.vmem [shape: bf16[1024,128], index: 1, kind: input, shape index: {}]   ;;  %s1276_s2 = inlined_call_operand.vmem [shape: f32[1,128], index: 2, kind: input, shape index: {}]   ;;  %s1277_s3 = inlined_call_operand.hbm [shape: f32[2,128], index: 3, kind: output, shape index: {}]  }
   0x1   :  { %v936_v0 = vld [vmem:[%s1275_s1 + $0x40] sm:$0xff]   ;;  %v940_v4 = vld [vmem:[%s1275_s1 + $0x48] sm:$0xff]   ;;  %v944_v8 = vld [vmem:[%s1275_s1 + $0x50] sm:$0xff]   ;;  %v155_v37 = vunpack.c.l.s4 %v1029_v36 }
   0x2   :  { %v937_v1 = vld [vmem:[%s1275_s1 + $0xc0] sm:$0xff]   ;;  %846 = vmatprep.subr.bf16.mxu0 %v936_v0  ;;  %v941_v5 = vld [vmem:[%s1275_s1 + $0xc8] sm:$0xff]   ;;  %v945_v9 = vld [vmem:[%s1275_s1 + $0xd0] sm:$0xff]   ;;  %v158_v33 = vshrl.u32 %v157_v28, 7 }
   0x3   :  { %v938_v2 = vld [vmem:[%s1275_s1] sm:$0xff]   ;;  %868 = vmatprep.subr.bf16.mxu1 %v937_v1  ;;  %v942_v6 = vld [vmem:[%s1275_s1 + $0x8] sm:$0xff]   ;;  %v946_v10 = vld [vmem:[%s1275_s1 + $0x10] sm:$0xff]   ;;  %v156_v40 = vunpack.c.0.s8 %v155_v37 }
   0x4   :  { %v939_v3 = vld [vmem:[%s1275_s1 + $0x80] sm:$0xff]   ;;  %847 = vmatpush3.bf16.msra.mxu0 %v938_v2  ;;  %v943_v7 = vld [vmem:[%s1275_s1 + $0x88] sm:$0xff]   ;;  %v947_v11 = vld [vmem:[%s1275_s1 + $0x90] sm:$0xff]  }
   0x5   :  { %869 = vmatpush3.bf16.msra.mxu1 %v939_v3  ;;  %848 = vmatprep.subr.bf16.mxu0 %v940_v4  ;;  %v948_v12 = vld [vmem:[%s1275_s1 + $0x58] sm:$0xff]   ;;  %v952_v16 = vld [vmem:[%s1275_s1 + $0x60] sm:$0xff]   ;;  %v956_v20 = vld [vmem:[%s1275_s1 + $0x68] sm:$0xff]   ;;  %v1156_v41 = vsub.s32 %v156_v40, %v158_v33 }
   0x6   :  { %870 = vmatprep.subr.bf16.mxu1 %v941_v5  ;;  %v949_v13 = vld [vmem:[%s1275_s1 + $0xd8] sm:$0xff]   ;;  %v953_v17 = vld [vmem:[%s1275_s1 + $0xe0] sm:$0xff]   ;;  %v957_v21 = vld [vmem:[%s1275_s1 + $0xe8] sm:$0xff]  }
   0x7   :  { %v950_v14 = vld [vmem:[%s1275_s1 + $0x18] sm:$0xff]   ;;  %v954_v18 = vld [vmem:[%s1275_s1 + $0x20] sm:$0xff]   ;;  %v958_v22 = vld [vmem:[%s1275_s1 + $0x28] sm:$0xff]  }
   0x8   :  { %849 = vmatpush3.bf16.msra.mxu0 %v942_v6  ;;  %v951_v15 = vld [vmem:[%s1275_s1 + $0x98] sm:$0xff]   ;;  %v955_v19 = vld [vmem:[%s1275_s1 + $0xa0] sm:$0xff]   ;;  %v959_v23 = vld [vmem:[%s1275_s1 + $0xa8] sm:$0xff]  }
   0x9   :  { %871 = vmatpush3.bf16.msra.mxu1 %v943_v7  ;;  %850 = vmatprep.subr.bf16.mxu0 %v944_v8  ;;  %v960_v24 = vld [vmem:[%s1275_s1 + $0x70] sm:$0xff]   ;;  %v964_v29 = vld [vmem:[%s1275_s1 + $0x78] sm:$0xff]   ;;  %v16_v34 = vld [vmem:[%s1274_s0] sm:$0xff] }
   0xa   :  { %872 = vmatprep.subr.bf16.mxu1 %v945_v9  ;;  %v961_v25 = vld [vmem:[%s1275_s1 + $0xf0] sm:$0xff]   ;;  %v965_v30 = vld [vmem:[%s1275_s1 + $0xf8] sm:$0xff]   ;;  %v969_v35 = vld [vmem:[%s1275_s1 + $0x140] sm:$0xff]   ;;  %v153_v39 = vcombine.high %v16_v34, %v16_v34  ;;  %v160_v42 = vrot.slane %v16_v34, %v1156_v41 }
   0xb   :  { %v962_v26 = vld [vmem:[%s1275_s1 + $0x30] sm:$0xff]   ;;  %v966_v31 = vld [vmem:[%s1275_s1 + $0x38] sm:$0xff]   ;;  %v970_v38 = vld [vmem:[%s1275_s1 + $0x1c0] sm:$0xff]  }
   0xc   :  { %851 = vmatpush3.bf16.msra.mxu0 %v946_v10  ;;  %v963_v27 = vld [vmem:[%s1275_s1 + $0xb0] sm:$0xff]   ;;  %v967_v32 = vld [vmem:[%s1275_s1 + $0xb8] sm:$0xff]   ;;  %v1160_v43 = vrot.slane %v153_v39, %v1156_v41  ;;  %v168_v44 = vcombine.high %v160_v42, %v160_v42  ;;  %v176_v45 = vrot.slane %v160_v42, %v1156_v41  ;;  %v971_v48 = vld [vmem:[%s1275_s1 + $0x100] sm:$0xff]  }
   0xd   :  { %873 = vmatpush3.bf16.msra.mxu1 %v947_v11  ;;  %852 = vmatprep.subr.bf16.mxu0 %v948_v12  ;;  %v973_v51 = vld [vmem:[%s1275_s1 + $0x148] sm:$0xff]   ;;  %v972_v53 = vld [vmem:[%s1275_s1 + $0x180] sm:$0xff]   ;;  %v977_v57 = vld [vmem:[%s1275_s1 + $0x150] sm:$0xff]  }
   0xe   :  { %874 = vmatprep.subr.bf16.mxu1 %v949_v13  ;;  %v169_v46 = vcombine.high %v1160_v43, %v1160_v43  ;;  %v190_v47 = vrot.slane %v168_v44, %v1156_v41  ;;  %v198_v50 = vcombine.high %v176_v45, %v176_v45  ;;  %v974_v54 = vld [vmem:[%s1275_s1 + $0x1c8] sm:$0xff]   ;;  %v978_v59 = vld [vmem:[%s1275_s1 + $0x1d0] sm:$0xff]   ;;  %v981_v61 = vld [vmem:[%s1275_s1 + $0x158] sm:$0xff]  }
   0xf   :  { %v975_v56 = vld [vmem:[%s1275_s1 + $0x108] sm:$0xff]   ;;  %v979_v60 = vld [vmem:[%s1275_s1 + $0x110] sm:$0xff]   ;;  %v982_v63 = vld [vmem:[%s1275_s1 + $0x1d8] sm:$0xff]  }
  0x10   :  { %853 = vmatpush3.bf16.msra.mxu0 %v950_v14  ;;  %v197_v49 = vrot.slane %v169_v46, %v1156_v41  ;;  %626 = vmatprep.mubr.bf16.mxu0 %v190_v47  ;;  %v200_v52 = vcombine.high %v190_v47, %v190_v47  ;;  %v976_v58 = vld [vmem:[%s1275_s1 + $0x188] sm:$0xff]   ;;  %v980_v62 = vld [vmem:[%s1275_s1 + $0x190] sm:$0xff]   ;;  %v983_v0 = vld [vmem:[%s1275_s1 + $0x118] sm:$0xff]  }
  0x11   :  { %875 = vmatpush3.bf16.msra.mxu1 %v951_v15  ;;  %854 = vmatprep.subr.bf16.mxu0 %v952_v16  ;;  %v985_v1 = vld [vmem:[%s1275_s1 + $0x160] sm:$0xff]   ;;  %v984_v2 = vld [vmem:[%s1275_s1 + $0x198] sm:$0xff]   ;;  %v989_v5 = vld [vmem:[%s1275_s1 + $0x168] sm:$0xff]  }
  0x12   :  { %876 = vmatprep.subr.bf16.mxu1 %v953_v17  ;;  %v201_v55 = vcombine.high %v197_v49, %v197_v49  ;;  %666 = vmatprep.mubr.bf16.mxu1 %v200_v52  ;;  %v986_v3 = vld [vmem:[%s1275_s1 + $0x1e0] sm:$0xff]   ;;  %v990_v7 = vld [vmem:[%s1275_s1 + $0x1e8] sm:$0xff]   ;;  %v993_v9 = vld [vmem:[%s1275_s1 + $0x170] sm:$0xff]  }
  0x13   :  { %v987_v4 = vld [vmem:[%s1275_s1 + $0x120] sm:$0xff]   ;;  %v991_v8 = vld [vmem:[%s1275_s1 + $0x128] sm:$0xff]  }
  0x14   :  { %855 = vmatpush3.bf16.msra.mxu0 %v954_v18  ;;  %v988_v6 = vld [vmem:[%s1275_s1 + $0x1a0] sm:$0xff]  }
  0x15   :  { %877 = vmatpush3.bf16.msra.mxu1 %v955_v19  ;;  %856 = vmatprep.subr.bf16.mxu0 %v956_v20 }
  0x16   :  { %878 = vmatprep.subr.bf16.mxu1 %v957_v21 }
  0x18   :  { %857 = vmatpush3.bf16.msra.mxu0 %v958_v22 }
  0x19   :  { %879 = vmatpush3.bf16.msra.mxu1 %v959_v23  ;;  %858 = vmatprep.subr.bf16.mxu0 %v960_v24 }
  0x1a   :  { %880 = vmatprep.subr.bf16.mxu1 %v961_v25 }
  0x1c   :  { %859 = vmatpush3.bf16.msra.mxu0 %v962_v26 }
  0x1d   :  { %881 = vmatpush3.bf16.msra.mxu1 %v963_v27  ;;  %860 = vmatprep.subr.bf16.mxu0 %v964_v29 }
  0x1e   :  { %882 = vmatprep.subr.bf16.mxu1 %v965_v30 }
  0x20   :  { %861 = vmatpush3.bf16.msra.mxu0 %v966_v31 }
  0x21   :  { %883 = vmatpush3.bf16.msra.mxu1 %v967_v32  ;;  %890 = vmatprep.subr.bf16.mxu0 %v969_v35 }
  0x22   :  { %912 = vmatprep.subr.bf16.mxu1 %v970_v38 }
  0x23   :  { %627 = vmatmul.mubr.bf16.vlgmr.msra.gmra.mrb[0].mxu0 %v176_v45 }
  0x24   :  { %891 = vmatpush3.bf16.msra.mxu0 %v971_v48  ;;  %667 = vmatmul.mubr.bf16.vlgmr.msra.gmra.mrb[0].mxu1 %v198_v50 }
  0x25   :  { %892 = vmatprep.subr.bf16.mxu0 %v973_v51  ;;  %913 = vmatpush3.bf16.msra.mxu1 %v972_v53 }
  0x26   :  { %706 = vmatprep.mubr.bf16.mxu0 %v197_v49  ;;  %914 = vmatprep.subr.bf16.mxu1 %v974_v54 }
  0x27   :  { %746 = vmatprep.mubr.bf16.mxu1 %v201_v55 }
  0x28   :  { %893 = vmatpush3.bf16.msra.mxu0 %v975_v56 }
  0x29   :  { %894 = vmatprep.subr.bf16.mxu0 %v977_v57  ;;  %915 = vmatpush3.bf16.msra.mxu1 %v976_v58 }
  0x2a   :  { %916 = vmatprep.subr.bf16.mxu1 %v978_v59 }
  0x2c   :  { %895 = vmatpush3.bf16.msra.mxu0 %v979_v60 }
  0x2d   :  { %896 = vmatprep.subr.bf16.mxu0 %v981_v61  ;;  %917 = vmatpush3.bf16.msra.mxu1 %v980_v62 }
  0x2e   :  { %918 = vmatprep.subr.bf16.mxu1 %v982_v63 }
  0x30   :  { %897 = vmatpush3.bf16.msra.mxu0 %v983_v0 }
  0x31   :  { %898 = vmatprep.subr.bf16.mxu0 %v985_v1  ;;  %919 = vmatpush3.bf16.msra.mxu1 %v984_v2 }
  0x32   :  { %920 = vmatprep.subr.bf16.mxu1 %v986_v3 }
  0x34   :  { %899 = vmatpush3.bf16.msra.mxu0 %v987_v4 }
  0x35   :  { %900 = vmatprep.subr.bf16.mxu0 %v989_v5 }
  0x36   :  { %8 = vsyncpa [#allocation3], 0  ;;  %921 = vmatpush3.bf16.msra.mxu1 %v988_v6  ;;  %v992_v10 = vld [vmem:[%s1275_s1 + $0x1a8] sm:$0xff]   ;;  %v994_v11 = vld [vmem:[%s1275_s1 + $0x1f0] sm:$0xff]   ;;  %v183_v17 = vrot.slane %v1160_v43, %v1156_v41  ;;  %vm754_vm0 = vcmask 1041408  }
  0x37   :  { %922 = vmatprep.subr.bf16.mxu1 %v990_v7  ;;  %v995_v12 = vld [vmem:[%s1275_s1 + $0x130] sm:$0xff]   ;;  %v997_v13 = vld [vmem:[%s1275_s1 + $0x178] sm:$0xff]   ;;  %v781_v21 = vld [vmem:[%s1276_s2] ss:$0 sm:$0xff] }
  0x38   :  { %901 = vmatpush3.bf16.msra.mxu0 %v991_v8  ;;  %v996_v14 = vld [vmem:[%s1275_s1 + $0x1b0] sm:$0xff]   ;;  %v998_v15 = vld [vmem:[%s1275_s1 + $0x1f8] sm:$0xff]   ;;  %v199_v19 = vcombine.high %v183_v17, %v183_v17 }
  0x39   :  { %902 = vmatprep.subr.bf16.mxu0 %v993_v9  ;;  %v999_v16 = vld [vmem:[%s1275_s1 + $0x138] sm:$0xff]  }
  0x3a   :  { %923 = vmatpush3.bf16.msra.mxu1 %v992_v10  ;;  %v1000_v18 = vld [vmem:[%s1275_s1 + $0x1b8] sm:$0xff]   ;;  %s1030_s1 = smov [#allocation2]  }
  0x3b   :  { %924 = vmatprep.subr.bf16.mxu1 %v994_v11  ;;  %s773_s2 = sshll.u32 %s1030_s1, 4  ;;  %s774_s2 = int_to_ptr.vmem [resolvable:$true] %s773_s2 }
  0x3c   :  { %903 = vmatpush3.bf16.msra.mxu0 %v995_v12  ;;  %s1005_s6 = scalar_lea.vmem %s774_s2, 32  ;;  %p1010_p1 = scmp.lt.s32.totalorder %s774_s2, %s774_s2 }
  0x3d   :  { %904 = vmatprep.subr.bf16.mxu0 %v997_v13  ;;  %p1006_p0 = scmp.ne.s32.totalorder %s774_s2, %s1005_s6  ;;  %p1011_p2 = scmp.lt.s32.totalorder %s1005_s6, %s1005_s6 }
  0x3e   :  { %925 = vmatpush3.bf16.msra.mxu1 %v996_v14 }
  0x3f   :  { %926 = vmatprep.subr.bf16.mxu1 %v998_v15  ;;  %p1012_p3 = por %p1011_p2, %p1010_p1 }
  0x40   :  { %905 = vmatpush3.bf16.msra.mxu0 %v999_v16 }
  0x41   :  { %p1013_p4 = pnand %p1012_p3, %p1006_p0 }
  0x42   :  { %927 = vmatpush3.bf16.msra.mxu1 %v1000_v18 }
  0x43   :  { %707 = vmatmul.mubr.bf16.vlgmr.msra.gmra.mrb[4].mxu0 %v183_v17 }
  0x45   :  { %747 = vmatmul.mubr.bf16.vlgmr.msra.gmra.mrb[4].mxu1 %v199_v19 }
  0xf6   :  { %v862_v20 = vpop.f32.mrb[0].mxu0 }
  0xf7   :  { %v863_v22 = vpop.f32.mrb[1].mxu0  ;;  %v884_v23 = vpop.f32.mrb[0].mxu1 }
  0xf8   :  { %v864_v24 = vadd.f32 %v863_v22, %v862_v20  ;;  %v865_v25 = vpop.f32.mrb[2].mxu0  ;;  %v885_v26 = vpop.f32.mrb[1].mxu1 }
  0xf9   :  { %v866_v27 = vpop.f32.mrb[3].mxu0  ;;  %v886_v29 = vadd.f32 %v885_v26, %v884_v23  ;;  %v887_v30 = vpop.f32.mrb[2].mxu1 }
  0xfa   :  { %v629_v28 = vadd.f32 %v864_v24, %v781_v21  ;;  %v888_v31 = vpop.f32.mrb[3].mxu1 }
  0xfc   :  { %v669_v32 = vadd.f32 %v886_v29, %v629_v28 }
 0x116   :  { %v906_v33 = vpop.f32.mrb[4].mxu0 }
 0x117   :  { %v907_v34 = vpop.f32.mrb[5].mxu0 }
 0x118   :  { %v928_v35 = vpop.f32.mrb[4].mxu1  ;;  %v908_v36 = vadd.f32 %v907_v34, %v906_v33  ;;  %v909_v37 = vpop.f32.mrb[6].mxu0 }
 0x119   :  { %v929_v38 = vpop.f32.mrb[5].mxu1  ;;  %v910_v39 = vpop.f32.mrb[7].mxu0 }
 0x11a   :  { %v709_v40 = vadd.f32 %v908_v36, %v669_v32  ;;  %v930_v41 = vadd.f32 %v929_v38, %v928_v35  ;;  %v931_v42 = vpop.f32.mrb[6].mxu1 }
 0x11b   :  { %v932_v43 = vpop.f32.mrb[7].mxu1 }
 0x11c   :  { %v749_v44 = vadd.f32 %v930_v41, %v709_v40 }
 0x11e   :  { %v755_v45 = vsel %vm754_vm0, %v749_v44, -inf }
 0x11f   :  { %756 = vmax.xlane.f32.xlu0 %v755_v45 }
 0x1ac   :  { %v757_v46 = vpop.xlane.xlu0 %756 }
 0x1ad   :  { %v758_v47 = vsub.f32 %v749_v44, %v757_v46 }
 0x1af   :  { %v759_v48 = vmul.f32 1.442695, %v758_v47 }
 0x1b1   :  { %1001 = vpow2.f32 %v759_v48 }
 0x1bb   :  { %v1002_v49 = vpop.eup %1001 }
 0x1bc   :  { %v761_v50 = vsel %vm754_vm0, %v1002_v49, 0.0 }
 0x1bd   :  { %762 = vadd.xlane.f32.xlu0 %v761_v50 }
 0x24a   :  { %v763_v51 = vpop.xlane.xlu0 %762 }
 0x24b   :  { %1003 = vrcp.f32 %v763_v51 }
 0x255   :  { %v1004_v52 = vpop.eup %1003 }
 0x256   :  { %v765_v53 = vmul.f32 %v1004_v52, %v1002_v49 }
 0x258   :  { %766 = vst [vmem:[#allocation2] sm:$0x3] %v765_v53 }
 0x259   :  { %1016 = shalt.err (!%p1013_p4)
}
 0x25a   :  { %s1017_s9 = scalar_lea.hbm %s1277_s3, 32 }
 0x25b   :  { %p1018_p5 = scmp.ne.s32.totalorder %s1277_s3, %s1017_s9  ;;  %p1021_p6 = scmp.lt.u32.totalorder %s1017_s9, %s1277_s3 }
 0x25d   :  { %p1023_p7 = pnand %p1021_p6, %p1018_p5 }
 0x25f   :  { %1026 = shalt.err (!%p1023_p7)
}
 0x260   :  { %776 = dma.vmem_to_hbm [thread:$0]  %s774_s2, 32, %s1277_s3, [#allocation3]  }
 0x261   :  { %1027 = dma.done.wait [#allocation3], 32  }
 0x262   :  { %1028 = vsyncadd [#allocation3], 4294967264 }
 0x263   :  { %780 = vsyncpa [#allocation3], 1 }

</bundles_post_ra>
